<compile_context>
chip_gen: v6e
topology: v6e:2x2x1
jax: 0.10.0
libtpu: 0.0.40
codegen_flags: <defaults>
</compile_context>

<pallas_src>
from math import pi

import jax
import jax.numpy as jnp
from jax.experimental import pallas as pl
from jax.experimental.pallas import tpu as pltpu

_PI_HALF = float(pi / 2.0)


def make_vdiffusion_kernel(inv_total: float):
    inv_total = float(inv_total)  # compile-time Python constant (not traced)

    def kernel(sig_ref,    # (B,)  f32, SMEM (scalar prefetch)
               x_ref,      # (C, tT) f32/bf16 tile of x[b, :, t*tT:(t+1)*tT]
               n_ref,      # (C, tT) f32/bf16 tile of noise
               w_ref,      # (C, C)  f32 (resident)
               b_ref,      # (C, 1)  f32 (resident)
               sp_ref,     # (C, 1)  f32 (resident)
               out_ref,    # (1, 1)  f32
               acc_ref):   # (C, tT) f32 VMEM accumulator scratch
        b = pl.program_id(0)
        t = pl.program_id(1)
        nb = pl.num_programs(0)
        nt = pl.num_programs(1)

        @pl.when(jnp.logical_and(b == 0, t == 0))
        def _():
            acc_ref[...] = jnp.zeros_like(acc_ref)

        # Per-batch sigma conditioning computed in-kernel (no HBM traffic).
        sig = sig_ref[b]                                   # scalar (SMEM)
        ang = (sig * _PI_HALF) * jnp.ones((1, 1), jnp.float32)
        alpha = jnp.cos(ang)                               # (1, 1), EUP
        beta = jnp.sin(ang)                                # (1, 1), EUP

        xf = x_ref[...].astype(jnp.float32)                # (C, tT)
        nf = n_ref[...].astype(jnp.float32)

        x_noisy = alpha * xf + beta * nf
        v_target = alpha * nf - beta * xf

        # Surrogate net: channel-mixing matmul + bias + sigma-conditioned shift.
        v_pred = jnp.dot(w_ref[...], x_noisy,
                         preferred_element_type=jnp.float32)
        v_pred = v_pred + b_ref[...] + sp_ref[...] * sig

        diff = v_pred - v_target
        acc_ref[...] += diff * diff                        # VPU only, per step

        @pl.when(jnp.logical_and(b == nb - 1, t == nt - 1))
        def _():
            partial = jnp.sum(acc_ref[...], axis=1, keepdims=True)   # (C, 1)
            total = jnp.sum(partial, axis=0, keepdims=True)          # (1, 1)
            out_ref[...] = total * inv_total

    return kernel


def _pick_tile_t(T: int, max_tile: int = 512) -> int:
    """Largest lane tile (multiple of 128, or full T) dividing T, capped."""
    if T <= max_tile:
        return T
    for cand in (max_tile, 256, 128):
        if cand % 128 == 0 and T % cand == 0:
            return cand
    return T  # fallback: full extent (always legal)


def vdiffusion_loss(x, noise, sigmas, w, bias, sproj, *, tile_t=None):
    """Scalar MSE(v_pred, v_target), matching VDiffusion.forward semantics."""
    B, C, T = x.shape
    inv_total = 1.0 / float(B * C * T)
    if tile_t is None:
        tile_t = _pick_tile_t(T)
    assert T % tile_t == 0
    n_t = T // tile_t

    kernel = make_vdiffusion_kernel(inv_total)

    grid_spec = pltpu.PrefetchScalarGridSpec(
        num_scalar_prefetch=1,               # sigmas -> SMEM, passed first
        grid=(B, n_t),
        in_specs=[
            # x / noise: native (B, C, T) layout, streamed tile-by-tile.
            pl.BlockSpec((pl.Squeezed(), C, tile_t),
                         lambda b, t, sig: (b, 0, t)),
            pl.BlockSpec((pl.Squeezed(), C, tile_t),
                         lambda b, t, sig: (b, 0, t)),
            # tiny weights stay resident (constant index maps).
            pl.BlockSpec((C, C), lambda b, t, sig: (0, 0)),
            pl.BlockSpec((C, 1), lambda b, t, sig: (0, 0)),
            pl.BlockSpec((C, 1), lambda b, t, sig: (0, 0)),
        ],
        out_specs=pl.BlockSpec((1, 1), lambda b, t, sig: (0, 0)),
        scratch_shapes=[pltpu.VMEM((C, tile_t), jnp.float32)],
    )

    out = pl.pallas_call(
        kernel,
        out_shape=jax.ShapeDtypeStruct((1, 1), jnp.float32),
        grid_spec=grid_spec,
        compiler_params=pltpu.CompilerParams(
            # Single resident (1,1) output / shared accumulator across both
            # grid axes -> both axes must stay "arbitrary" (serial on one TC).
            dimension_semantics=("arbitrary", "arbitrary")),
    )(sigmas, x, noise, w, bias, sproj)
    return out[0, 0]


def vdiffusion_reference(x, noise, sigmas, w, bias, sproj):
    sig = sigmas[:, None, None]
    alpha = jnp.cos(sig * (pi / 2.0))
    beta = jnp.sin(sig * (pi / 2.0))
    xf = x.astype(jnp.float32)
    nf = noise.astype(jnp.float32)
    x_noisy = alpha * xf + beta * nf
    v_target = alpha * nf - beta * xf
    v_pred = (jnp.einsum('oc,bct->bot', w, x_noisy)
              + bias[None] + sproj[None] * sig)
    return jnp.mean((v_pred - v_target) ** 2)


if __name__ == "__main__":
    B, C, T = 2, 8, 1024   # small shapes; tile_t=512 -> grid (2, 2)

    key = jax.random.PRNGKey(0)
    k_x, k_noise, k_sig, k_w, k_b, k_sp = jax.random.split(key, 6)

    # Inputs (noise / sigmas sampled like the module's forward, but with a
    # fixed PRNG key so the run is deterministic).
    x = jax.random.normal(k_x, (B, C, T), dtype=jnp.float32)
    noise = jax.random.normal(k_noise, (B, C, T), dtype=jnp.float32)
    sigmas = jax.random.uniform(k_sig, (B,), dtype=jnp.float32)  # U(0, 1)

    # Deterministic surrogate-net parameters.
    w = jax.random.normal(k_w, (C, C), dtype=jnp.float32) * 0.1
    bias = jax.random.normal(k_b, (C, 1), dtype=jnp.float32) * 0.01
    sproj = jax.random.normal(k_sp, (C, 1), dtype=jnp.float32) * 0.1

    loss = jax.block_until_ready(
        vdiffusion_loss(x, noise, sigmas, w, bias, sproj))
    loss_ref = jax.block_until_ready(
        vdiffusion_reference(x, noise, sigmas, w, bias, sproj))

    assert jnp.allclose(loss, loss_ref, rtol=1e-3, atol=1e-3), (loss, loss_ref)
    print("KERNEL_OK")
</pallas_src>

<mosaic_0001>
module attributes {stable_mosaic.version = 11 : i64} {
  func.func @kernel(%arg0: i32, %arg1: i32, %arg2: memref<2xf32, #tpu.memory_space<smem>>, %arg3: memref<1x8x512xf32, #tpu.memory_space<vmem>>, %arg4: memref<1x8x512xf32, #tpu.memory_space<vmem>>, %arg5: memref<8x8xf32, #tpu.memory_space<vmem>>, %arg6: memref<8x1xf32, #tpu.memory_space<vmem>>, %arg7: memref<8x1xf32, #tpu.memory_space<vmem>>, %arg8: memref<1x1xf32, #tpu.memory_space<vmem>>, %arg9: memref<8x512xf32, #tpu.memory_space<vmem>>) attributes {dimension_semantics = [#tpu.dimension_semantics<arbitrary>, #tpu.dimension_semantics<arbitrary>], iteration_bounds = array<i64: 2, 2>, scalar_prefetch = 1 : i64, scratch_operands = 1 : i64, tpu.core_type = #tpu.core_type<tc>, window_params = [{transform_indices = @transform_0, window_bounds = array<i64: 1, 8, 512>}, {transform_indices = @transform_1, window_bounds = array<i64: 1, 8, 512>}, {pipeline_mode = #tpu.pipeline_mode<synchronous>, transform_indices = @transform_2, window_bounds = array<i64: 8, 8>}, {pipeline_mode = #tpu.pipeline_mode<synchronous>, transform_indices = @transform_3, window_bounds = array<i64: 8, 1>}, {pipeline_mode = #tpu.pipeline_mode<synchronous>, transform_indices = @transform_4, window_bounds = array<i64: 8, 1>}, {pipeline_mode = #tpu.pipeline_mode<synchronous>, transform_indices = @transform_5, window_bounds = array<i64: 1, 1>}]} {
    %c0_i32 = arith.constant 0 : i32
    %0 = arith.cmpi eq, %arg0, %c0_i32 : i32
    %c0_i32_0 = arith.constant 0 : i32
    %1 = arith.cmpi eq, %arg1, %c0_i32_0 : i32
    %2 = arith.andi %0, %1 : i1
    %3 = arith.extui %2 : i1 to i32
    %c0_i32_1 = arith.constant 0 : i32
    %4 = arith.cmpi ne, %3, %c0_i32_1 : i32
    scf.if %4 {
      %cst_21 = arith.constant 0.000000e+00 : f32
      %47 = vector.broadcast %cst_21 : f32 to vector<8x512xf32>
      %c0_22 = arith.constant 0 : index
      %c0_23 = arith.constant 0 : index
      %48 = vector.load %arg9[%c0_22, %c0_23] : memref<8x512xf32, #tpu.memory_space<vmem>>, vector<8x512xf32>
      tpu.vector_store %arg9[%c0_22, %c0_23], %47 {strides = array<i32>} : memref<8x512xf32, #tpu.memory_space<vmem>>, vector<8x512xf32>,
    } else {
    }
    %5 = arith.index_cast %arg0 : i32 to index
    %6 = memref.load %arg2[%5] : memref<2xf32, #tpu.memory_space<smem>>
    %cst = arith.constant 1.57079637 : f32
    %7 = arith.mulf %6, %cst : f32
    %cst_2 = arith.constant 1.000000e+00 : f32
    %8 = vector.broadcast %cst_2 : f32 to vector<1x1xf32>
    %9 = vector.broadcast %7 : f32 to vector<1x1xf32>
    %10 = arith.mulf %9, %8 : vector<1x1xf32>
    %11 = math.cos %10 : vector<1x1xf32>
    %12 = math.sin %10 : vector<1x1xf32>
    %c0 = arith.constant 0 : index
    %c0_3 = arith.constant 0 : index
    %c0_4 = arith.constant 0 : index
    %13 = vector.load %arg3[%c0, %c0_3, %c0_4] : memref<1x8x512xf32, #tpu.memory_space<vmem>>, vector<1x8x512xf32>
    %14 = vector.shape_cast %13 : vector<1x8x512xf32> to vector<8x512xf32>
    %c0_5 = arith.constant 0 : index
    %c0_6 = arith.constant 0 : index
    %c0_7 = arith.constant 0 : index
    %15 = vector.load %arg4[%c0_5, %c0_6, %c0_7] : memref<1x8x512xf32, #tpu.memory_space<vmem>>, vector<1x8x512xf32>
    %16 = vector.shape_cast %15 : vector<1x8x512xf32> to vector<8x512xf32>
    %17 = vector.broadcast %11 : vector<1x1xf32> to vector<8x512xf32>
    %18 = arith.mulf %17, %14 : vector<8x512xf32>
    %19 = vector.broadcast %12 : vector<1x1xf32> to vector<8x512xf32>
    %20 = arith.mulf %19, %16 : vector<8x512xf32>
    %21 = arith.addf %18, %20 : vector<8x512xf32>
    %22 = vector.broadcast %11 : vector<1x1xf32> to vector<8x512xf32>
    %23 = arith.mulf %22, %16 : vector<8x512xf32>
    %24 = vector.broadcast %12 : vector<1x1xf32> to vector<8x512xf32>
    %25 = arith.mulf %24, %14 : vector<8x512xf32>
    %26 = arith.subf %23, %25 : vector<8x512xf32>
    %c0_8 = arith.constant 0 : index
    %c0_9 = arith.constant 0 : index
    %27 = vector.load %arg5[%c0_8, %c0_9] : memref<8x8xf32, #tpu.memory_space<vmem>>, vector<8x8xf32>
    %cst_10 = arith.constant dense<0.000000e+00> : vector<8x512xf32>
    %28 = tpu.matmul %27, %21, %cst_10 {dimension_numbers = #tpu.dot_dimension_numbers<[1], [0], [0], [1], [0, 0, 1, 1], [], []>} : vector<8x8xf32>, vector<8x512xf32>, vector<8x512xf32> -> vector<8x512xf32>
    %c0_11 = arith.constant 0 : index
    %c0_12 = arith.constant 0 : index
    %29 = vector.load %arg6[%c0_11, %c0_12] : memref<8x1xf32, #tpu.memory_space<vmem>>, vector<8x1xf32>
    %30 = vector.broadcast %29 : vector<8x1xf32> to vector<8x512xf32>
    %31 = arith.addf %28, %30 : vector<8x512xf32>
    %c0_13 = arith.constant 0 : index
    %c0_14 = arith.constant 0 : index
    %32 = vector.load %arg7[%c0_13, %c0_14] : memref<8x1xf32, #tpu.memory_space<vmem>>, vector<8x1xf32>
    %33 = vector.broadcast %6 : f32 to vector<8x1xf32>
    %34 = arith.mulf %32, %33 : vector<8x1xf32>
    %35 = vector.broadcast %34 : vector<8x1xf32> to vector<8x512xf32>
    %36 = arith.addf %31, %35 : vector<8x512xf32>
    %37 = arith.subf %36, %26 : vector<8x512xf32>
    %c0_15 = arith.constant 0 : index
    %c0_16 = arith.constant 0 : index
    %38 = vector.load %arg9[%c0_15, %c0_16] : memref<8x512xf32, #tpu.memory_space<vmem>>, vector<8x512xf32>
    %39 = arith.mulf %37, %37 : vector<8x512xf32>
    %40 = arith.addf %38, %39 : vector<8x512xf32>
    %c0_17 = arith.constant 0 : index
    %c0_18 = arith.constant 0 : index
    %41 = vector.load %arg9[%c0_17, %c0_18] : memref<8x512xf32, #tpu.memory_space<vmem>>, vector<8x512xf32>
    tpu.vector_store %arg9[%c0_17, %c0_18], %40 {strides = array<i32>} : memref<8x512xf32, #tpu.memory_space<vmem>>, vector<8x512xf32>,
    %c1_i32 = arith.constant 1 : i32
    %42 = arith.cmpi eq, %arg0, %c1_i32 : i32
    %c1_i32_19 = arith.constant 1 : i32
    %43 = arith.cmpi eq, %arg1, %c1_i32_19 : i32
    %44 = arith.andi %42, %43 : i1
    %45 = arith.extui %44 : i1 to i32
    %c0_i32_20 = arith.constant 0 : i32
    %46 = arith.cmpi ne, %45, %c0_i32_20 : i32
    scf.if %46 {
      %c0_21 = arith.constant 0 : index
      %c0_22 = arith.constant 0 : index
      %47 = vector.load %arg9[%c0_21, %c0_22] : memref<8x512xf32, #tpu.memory_space<vmem>>, vector<8x512xf32>
      %cst_23 = arith.constant dense<0.000000e+00> : vector<8xf32>
      %48 = vector.multi_reduction <add>, %47, %cst_23 [1] : vector<8x512xf32> to vector<8xf32>
      %49 = vector.shape_cast %48 : vector<8xf32> to vector<8x1xf32>
      %cst_24 = arith.constant dense<0.000000e+00> : vector<1xf32>
      %50 = vector.multi_reduction <add>, %49, %cst_24 [0] : vector<8x1xf32> to vector<1xf32>
      %51 = vector.shape_cast %50 : vector<1xf32> to vector<1x1xf32>
      %cst_25 = arith.constant 6.10351563E-5 : f32
      %52 = vector.broadcast %cst_25 : f32 to vector<1x1xf32>
      %53 = arith.mulf %51, %52 : vector<1x1xf32>
      %c0_26 = arith.constant 0 : index
      %c0_27 = arith.constant 0 : index
      %54 = vector.load %arg8[%c0_26, %c0_27] : memref<1x1xf32, #tpu.memory_space<vmem>>, vector<1x1xf32>
      tpu.vector_store %arg8[%c0_26, %c0_27], %53 {strides = array<i32>} : memref<1x1xf32, #tpu.memory_space<vmem>>, vector<1x1xf32>,
    } else {
    }
    return
  }
  func.func @transform_0(%arg0: i32, %arg1: i32, %arg2: memref<2xf32, #tpu.memory_space<smem>>) -> (i32, i32, i32) {
    %c0_i32 = arith.constant 0 : i32
    %c0_i32_0 = arith.constant 0 : i32
    return %arg0, %c0_i32, %arg1 : i32, i32, i32
  }
  func.func @transform_1(%arg0: i32, %arg1: i32, %arg2: memref<2xf32, #tpu.memory_space<smem>>) -> (i32, i32, i32) {
    %c0_i32 = arith.constant 0 : i32
    %c0_i32_0 = arith.constant 0 : i32
    return %arg0, %c0_i32, %arg1 : i32, i32, i32
  }
  func.func @transform_2(%arg0: i32, %arg1: i32, %arg2: memref<2xf32, #tpu.memory_space<smem>>) -> (i32, i32) {
    %c0_i32 = arith.constant 0 : i32
    %c0_i32_0 = arith.constant 0 : i32
    %c0_i32_1 = arith.constant 0 : i32
    return %c0_i32, %c0_i32_0 : i32, i32
  }
  func.func @transform_3(%arg0: i32, %arg1: i32, %arg2: memref<2xf32, #tpu.memory_space<smem>>) -> (i32, i32) {
    %c0_i32 = arith.constant 0 : i32
    %c0_i32_0 = arith.constant 0 : i32
    %c0_i32_1 = arith.constant 0 : i32
    return %c0_i32, %c0_i32_0 : i32, i32
  }
  func.func @transform_4(%arg0: i32, %arg1: i32, %arg2: memref<2xf32, #tpu.memory_space<smem>>) -> (i32, i32) {
    %c0_i32 = arith.constant 0 : i32
    %c0_i32_0 = arith.constant 0 : i32
    %c0_i32_1 = arith.constant 0 : i32
    return %c0_i32, %c0_i32_0 : i32, i32
  }
  func.func @transform_5(%arg0: i32, %arg1: i32, %arg2: memref<2xf32, #tpu.memory_space<smem>>) -> (i32, i32) {
    %c0_i32 = arith.constant 0 : i32
    %c0_i32_0 = arith.constant 0 : i32
    %c0_i32_1 = arith.constant 0 : i32
    return %c0_i32, %c0_i32_0 : i32, i32
  }
}

</mosaic_0001>

<bundles_post_ra>
// kernel: tpu_custom_call.1
= control target key start
LH: loop header
LB: loop body
LE: loop exit
PB: predicated region body
PF: predicated region fallthrough
CT: control target
= control target key end

     0   :  { %s1430_s0 = inlined_call_operand.vmem [shape: f32[2], index: 0, kind: input, shape index: {}]   ;;  %s1431_s1 = inlined_call_operand.hbm [shape: f32[2,8,1024], index: 1, kind: input, shape index: {}]   ;;  %s1432_s2 = inlined_call_operand.hbm [shape: f32[2,8,1024], index: 2, kind: input, shape index: {}]   ;;  %s1433_s3 = inlined_call_operand.vmem [shape: f32[8,8], index: 3, kind: input, shape index: {}]   ;;  %s1434_s4 = inlined_call_operand.vmem [shape: f32[8,1], index: 4, kind: input, shape index: {}]   ;;  %s1435_s5 = inlined_call_operand.vmem [shape: f32[8,1], index: 5, kind: input, shape index: {}]   ;;  %s1436_s6 = inlined_call_operand.hbm [shape: f32[1,1], index: 6, kind: output, shape index: {}]  }
   0x1   :  { %s11_s23 = sshll.u32 %s1430_s0, 4  ;;  %s12_s23 = int_to_ptr.vmem [resolvable:$true] %s11_s23 }
   0x2   :  { %s985_s24 = scalar_lea.vmem %s12_s23, 16  ;;  %p990_p1 = scmp.lt.s32.totalorder %s12_s23, %s12_s23 }
   0x3   :  { %p986_p0 = scmp.ne.s32.totalorder %s12_s23, %s985_s24  ;;  %p991_p2 = scmp.lt.s32.totalorder %s985_s24, %s985_s24 }
   0x5   :  { %p992_p3 = por %p991_p2, %p990_p1 }
   0x7   :  { %p993_p4 = pnand %p992_p3, %p986_p0 }
   0x9   :  { %996 = shalt.err (!%p993_p4)  }
   0xa   :  { %s1155_s25 = smov [#allocation4]  }
   0xb   :  { %14 = dma.vmem_to_smem %s12_s23, 16, %s1155_s25, [#allocation3] }
   0xc   :  { %1109 = dma.done.wait [#allocation3], 16 }
   0xd   :  { %1110 = vsyncadd [#allocation3], 4294967280 }
   0xe   :  { %16 = sfence }
   0xf   :  { %17 = vsyncpa [#allocation6], 0 }
  0x10   :  { %19 = vsyncpa [#allocation6 + $0x1], 0 }
  0x11   :  { %20 = vsyncpa [#allocation9], 0 }
  0x12   :  { %22 = vsyncpa [#allocation9 + $0x1], 0 }
  0x13   :  { %23 = vsyncpa [#allocation7], 0  ;;  %s1206_s26 = smov 0   ;;  %s1208_s0 = smov 0  }
  0x14   :  { %s1210_s27 = smov 0   ;;  %s1212_s28 = smov 0  }
  0x15   :  { %s1214_s29 = smov 0   ;;  %s1216_s30 = smov 0  }
  0x16   :  { %s1218_s7 = smov 0   ;;  %s1220_s8 = smov 0  }
  0x17 LB: > { %s1437_s9 = sadd.s32 4294967295, %s1153_s8   ;;  %s38_s10 = sadd.s32 1, %s1145_s30  ;;  %s1153_s8 = sphi %s1220_s8, %s29_s8   ;;  %s1149_s7 = sphi %s1218_s7, %s1454_s7   ;;  %s1145_s30 = sphi %s1216_s30, %s1453_s30   ;;  %s1141_s29 = sphi %s1214_s29, %s1452_s29   ;;  %s1137_s28 = sphi %s1212_s28, %s1451_s28   ;;  %s1133_s27 = sphi %s1210_s27, %s1450_s27   ;;  %s1129_s0 = sphi %s1208_s0, %s1449_s0   ;;  %s1125_s26 = sphi %s1206_s26, %s1448_s26  }
  0x18   : > { %p39_p5 = scmp.ge.s32.totalorder %s38_s10, 2  ;;  %s41_s11 = sadd.s32 1, %s1149_s7 }
  0x19   : > { %s50_s12 = sadd.s32 1, %s1133_s27  ;;  %p57_p6 = scmp.ne.s32.totalorder %s1133_s27, %s1129_s0 }
  0x1a   : > { %s1456_s10 = smov (%p39_p5, %s38_s10), 0  ;;  %s1458_s11 = smov (!%p39_p5, %s41_s11), %s1149_s7 }
  0x1b   : > { %s46_s13 = ssub.s32 %s1145_s30, %s1456_s10  ;;  %p58_p7 = scmp.eq.s32.totalorder %s1153_s8, 0 }
  0x1c   : > { %p43_p8 = scmp.ge.s32.totalorder %s1458_s11, 2  ;;  %p63_p9 = scmp.ne.s32.totalorder %s1129_s0, %s1125_s26 }
  0x1d   : > { %p1257_p10 = por %p58_p7, %p57_p6  ;;  %p64_p11 = scmp.eq.s32.totalorder %s1437_s9, 0 }
  0x1e   : > { %s1460_s11 = smov (%p43_p8, %s1458_s11), 0  ;;  %p902_p13 = scmp.lt.s32.totalorder %s1153_s8, 4 }
  0x1f   : > { %1440 = sst [smem:[#allocation15_spill]] %s1460_s11  ;;  %p1265_p12 = por %p64_p11, %p63_p9 }
  0x20   : > { %s45_s16 = ssub.s32 %s1149_s7, %s1460_s11  ;;  %s1273_s18 = sand.u32 1, %s1133_s27  }
  0x21   : > { %s47_s17 = sor.u32 %s46_s13, %s45_s16  ;;  %s858_s19 = sshll.u32 %s1273_s18, 5 }
  0x22   : > { %p48_p0 = scmp.eq.s32.totalorder %s47_s17, 0  ;;  %s859_s20 = sshll.u32 %s1145_s30, 2 }
  0x23   : > { %s860_s22 = sshll.u32 %s1149_s7, 3  ;;  %s212_s24 = scalar_lea.vmem [#allocation5], %s858_s19 }
  0x24   : > { %s1278_s21 = scalar_select %p48_p0, %s1133_s27, %s50_s12  }
  0x25   : > { %s218_s23 = sadd.s32 %s860_s22, %s859_s20  ;;  %s222_s25 = sshll.u32 %s212_s24, 4  ;;  %s223_s25 = int_to_ptr.vmem [resolvable:$true] %s222_s25 }
  0x26   : > { %s861_s26 = sshll.u32 %s218_s23, 7  ;;  %p1290_p1 = pnand %p902_p13, %p1257_p10 }
  0x27   : > { %s220_s13 = scalar_lea.hbm %s1431_s1, %s861_s26  ;;  %p866_p2 = scmp.ge.s32.totalorder %s1153_s8, 1 }
  0x28   : > { %p248_p3 = scmp.lt.s32.totalorder %s1153_s8, 5  ;;  %s209_s12 = scalar_lea.sflag [#allocation6], %s1273_s18 }
  0x29   : > { %p999_p4 = pneg %p1290_p1  ;;  %s1010_s17 = scalar_lea.vmem %s223_s25, 512 }
  0x2a   : > { %p1011_p5 = scmp.ne.s32.totalorder %s223_s25, %s1010_s17  ;;  %s1156_s9 = smov [#allocation5]  }
  0x2b   : > { %s1015_s11 = sshll.u32 %s1156_s9, 4  ;;  %s1016_s11 = int_to_ptr.vmem [resolvable:$false] %s1015_s11 }
  0x2c   : > { %p1013_p6 = pnand %p1011_p5, %p999_p4  ;;  %s1017_s14 = scalar_lea.vmem %s1016_s11, 1024 }
  0x2d   : > { %p1018_p8 = scmp.lt.s32.totalorder %s223_s25, %s1016_s11  ;;  %p1019_p9 = scmp.lt.s32.totalorder %s1017_s14, %s1010_s17 }
  0x2e   : > { %p1014_p7 = pneg %p1013_p6 }
  0x2f   : > { %p1020_p10 = por %p1019_p9, %p1018_p8 }
  0x31   : > { %p1021_p11 = pnand %p1020_p10, %p1014_p7 }
  0x33   : > { %1024 = shalt.err (!%p1021_p11)
}
  0x34   : > { %898 = dma.hbm_to_vmem [thread:$0]  (!%p1290_p1), %s220_s13, 512, %s223_s25, %s209_s12  }
  0x35   : > { %p1308_p13 = pnand %p866_p2, %p248_p3  ;;  %s241_s24 = scalar_lea.hbm %s1432_s2, %s861_s26 }
  0x36   : > { %s233_s17 = scalar_lea.vmem [#allocation8], %s858_s19  ;;  %s230_s11 = scalar_lea.sflag [#allocation9], %s1273_s18 }
  0x37   : > { %s243_s9 = sshll.u32 %s233_s17, 4  ;;  %s1157_s25 = smov [#allocation8]   ;;  %s244_s9 = int_to_ptr.vmem [resolvable:$true] %s243_s9 }
  0x38   : > { %s1038_s14 = scalar_lea.vmem %s244_s9, 512  ;;  %s1043_s13 = sshll.u32 %s1157_s25, 4  ;;  %s1044_s13 = int_to_ptr.vmem [resolvable:$false] %s1043_s13 }
  0x39   : > { %p1039_p0 = scmp.ne.s32.totalorder %s244_s9, %s1038_s14  ;;  %s1045_s12 = scalar_lea.vmem %s1044_s13, 1024 }
  0x3a   : > { %p1046_p2 = scmp.lt.s32.totalorder %s244_s9, %s1044_s13  ;;  %p1047_p3 = scmp.lt.s32.totalorder %s1045_s12, %s1038_s14 }
  0x3b   : > { %p1041_p5 = pnand %p1039_p0, %p999_p4 }
  0x3c   : > { %p1048_p7 = por %p1047_p3, %p1046_p2 }
  0x3d   : > { %p1042_p6 = pneg %p1041_p5 }
  0x3f   : > { %p1049_p8 = pnand %p1048_p7, %p1042_p6 }
  0x41   : > { %1052 = shalt.err (!%p1049_p8)
}
  0x42   : > { %901 = dma.hbm_to_vmem [thread:$0]  (!%p1290_p1), %s241_s24, 512, %s244_s9, %s230_s11  }
  0x43   : > { %252 = sbr.rel (%p1308_p13) target bundleno = 573 (0x23d), region = 40  ;;  %s254_s18 = sand.u32 (!%p1308_p13), 1, %s1129_s0  }
  0x44   : > { %s867_s19 = sshll.u32 (!%p1308_p13), %s254_s18, 5  ;;  %s255_s26 = scalar_lea.sflag (!%p1308_p13), [#allocation6], %s254_s18 }
  0x45   : > { %s1326_s22 = scalar_lea.vmem (!%p1308_p13), [#allocation5], %s867_s19 }
  0x48   : > { %1112 = dma.done.wait (%p1265_p12), %s255_s26, 512  }
  0x49   : > { %1114 = vsyncadd (%p1265_p12), %s255_s26, 4294966784  ;;  %s264_s23 = scalar_lea.sflag [#allocation9], %s254_s18  ;;  %s1332_s17 = scalar_lea.vmem [#allocation8], %s867_s19 }
  0x4a   : > { %1116 = dma.done.wait (%p1265_p12), %s264_s23, 512  }
  0x4b   : > { %1118 = vsyncadd (%p1265_p12), %s264_s23, 4294966784  ;;  %p296_p1 = scmp.eq.s32.totalorder %s1141_s29, 0  ;;  %p297_p4 = scmp.eq.s32.totalorder %s1137_s28, 0 }
  0x4d   : > { %p298_p9 = pnand %p297_p4, %p296_p1 }
  0x4f   : > { %301 = sbr.rel (%p298_p9) target bundleno = 87 (0x57), region = 52 }
  0x54   : > { %v1158_v0 = vmov 0.0  }
  0x55   : > { %302 = vst [vmem:[#allocation2 + $0x10] sm:$0xff] %v1158_v0  ;;  %303 = vst [vmem:[#allocation2] sm:$0xff] %v1158_v0 }
  0x56   : > { %304 = vst [vmem:[#allocation2 + $0x18] sm:$0xff] %v1158_v0  ;;  %305 = vst [vmem:[#allocation2 + $0x8] sm:$0xff] %v1158_v0 }
  0x57 PF: > { %s306_s16 = sld [smem:[#allocation4 + %s1141_s29]]  ;;  %v1159_v1 = vmov 0.0   ;;  %v1160_v2 = vmov 0   ;;  %v549_v3 = vld [vmem:[%s1434_s4] sm:$0xff]  ;;  %v1161_v19 = vmov 683565275  }
  0x58   : > { %623 = vmatprep.mubr.f32.mxu0 %v1159_v1  ;;  %694 = vmatprep.mubr.f32.mxu1 %v1159_v1  ;;  %v701_v4 = vld [vmem:[%s1435_s5] sm:$0xff]  ;;  %v1162_v21 = vmov 2475754826   ;;  %v1163_v23 = vmov 2131351028   ;;  %p733_p12 = scmp.eq.s32.totalorder %s1141_s29, 1 }
  0x59   : > { %980 = vset.pattern.permute.xlu0 %v1160_v2  ;;  %v1164_v25 = vmov 2102212464   ;;  %v1165_v27 = vmov 920167782   ;;  %v1166_v34 = vmov 1326507024  }
  0x5a   : > { %552 = vperm.xlu0 %980, %v549_v3   ;;  %p734_p10 = scmp.eq.s32.totalorder %s1137_s28, 1 }
  0x5c   : > { %p1383_p11 = pnand %p734_p10, %p733_p12 }
  0x5d   : > { %s307_s11 = smul.f32 1.5707964, %s306_s16  ;;  %v702_v5 = vstv %s306_s16 }
  0x5e   : > { %v703_v6 = vmul.f32 %v702_v5, %v701_v4 }
  0x5f   : > { %v1347_v7 = vstv %s307_s11 }
  0x60   : > { %v312_v8 = vand.u32 2139095040, %v1347_v7  ;;  %706 = vperm.xlu0 %980, %v703_v6   ;;  %v309_v10 = vand.u32 2147483647, %v1347_v7  ;;  %vm311_vm7 = vcmp.lt.s32.totalorder %v1347_v7, 0  ;;  %vm401_vm15 = vweird.f32 %v1347_v7 }
  0x62   : > { %v313_v9 = vshrl.u32 %v312_v8, 23  ;;  %v316_v13 = vand.u32 8388607, %v309_v10  ;;  %vm310_vm8 = vcmp.le.f32.partialorder %v309_v10, 0.7853982 }
  0x64   : > { %v869_v11 = vadd.s32 4294967169, %v313_v9  ;;  %v317_v16 = vor.u32 8388608, %v316_v13 }
  0x66   : > { %v319_v12 = vadd.s32 1, %v869_v11  ;;  %v357_v36 = vshll.u32 %v317_v16, 8 }
  0x68   : > { %vm320_vm0 = vcmp.gt.s32.totalorder %v319_v12, 0 }
  0x69   : > { %v321_v14 = vsel %vm320_vm0, %v319_v12, 0  ;;  %vm555_vm0 = vcmask 64512  }
  0x6a   : > { %v323_v15 = vand.u32 31, %v321_v14  ;;  %v322_v17 = vshrl.u32 %v321_v14, 5 }
  0x6c   : > { %v324_v18 = vsub.s32 32, %v323_v15  ;;  %v326_v20 = vshll.u32 %v1161_v19, %v323_v15  ;;  %v329_v22 = vshll.u32 %v1162_v21, %v323_v15  ;;  %v332_v24 = vshll.u32 %v1163_v23, %v323_v15 }
  0x6d   : > { %v335_v26 = vshll.u32 %v1164_v25, %v323_v15  ;;  %v338_v28 = vshll.u32 %v1165_v27, %v323_v15  ;;  %vm341_vm1 = vcmp.lt.s32.totalorder %v322_v17, 1  ;;  %vm344_vm2 = vcmp.lt.s32.totalorder %v322_v17, 4 }
  0x6e   : > { %v325_v29 = vshrl.u32 %v1161_v19, %v324_v18  ;;  %v327_v30 = vshrl.u32 %v1162_v21, %v324_v18  ;;  %v330_v31 = vshrl.u32 %v1163_v23, %v324_v18  ;;  %v333_v32 = vshrl.u32 %v1164_v25, %v324_v18 }
  0x6f   : > { %v336_v33 = vshrl.u32 %v1165_v27, %v324_v18  ;;  %v339_v35 = vshrl.u32 %v1166_v34, %v324_v18  ;;  %vm342_vm3 = vcmp.lt.s32.totalorder %v322_v17, 2  ;;  %vm343_vm4 = vcmp.lt.s32.totalorder %v322_v17, 3 }
  0x70   : > { %v328_v37 = vor.u32 %v327_v30, %v326_v20  ;;  %v331_v38 = vor.u32 %v330_v31, %v329_v22  ;;  %v334_v39 = vor.u32 %v333_v32, %v332_v24 }
  0x71   : > { %v337_v40 = vor.u32 %v336_v33, %v335_v26  ;;  %v340_v41 = vor.u32 %v339_v35, %v338_v28 }
  0x72   : > { %v345_v42 = vsel %vm341_vm1, %v325_v29, %v328_v37  ;;  %v346_v43 = vsel %vm344_vm2, %v334_v39, 2102212464  ;;  %v349_v44 = vsel %vm341_vm1, %v328_v37, %v331_v38  ;;  %v353_v45 = vsel %vm341_vm1, %v331_v38, %v334_v39  ;;  %v517_v37 = vld [vmem:[%s1326_s22 + $0x8] sm:$0xff] }
  0x73   : > { %v347_v46 = vsel %vm343_vm4, %v331_v38, %v346_v43  ;;  %v350_v47 = vsel %vm344_vm2, %v337_v40, 920167782  ;;  %v354_v48 = vsel %vm344_vm2, %v340_v41, 1326507024  ;;  %v521_v38 = vld [vmem:[%s1332_s17 + $0x8] sm:$0xff]  ;;  %v519_v41 = vld [vmem:[%s1326_s22 + $0x18] sm:$0xff] }
  0x74   : > { %v351_v49 = vsel %vm343_vm4, %v334_v39, %v350_v47  ;;  %v355_v50 = vsel %vm343_vm4, %v337_v40, %v354_v48  ;;  %v348_v51 = vsel %vm342_vm3, %v345_v42, %v347_v46  ;;  %v523_v42 = vld [vmem:[%s1332_s17 + $0x18] sm:$0xff]  ;;  %v520_v46 = vld [vmem:[%s1332_s17] sm:$0xff] }
  0x75   : > { %v352_v52 = vsel %vm342_vm3, %v349_v44, %v351_v49  ;;  %v356_v53 = vsel %vm342_vm3, %v353_v45, %v355_v50  ;;  %v364_v58 = vmul.u32 %v357_v36, %v348_v51  ;;  %v516_v45 = vld [vmem:[%s1326_s22] sm:$0xff] }
  0x76   : > { %v1353_v54 = vmul.u32.u64.low %v357_v36, %v356_v53  ;;  %v1354_v55 = vmul.u32.u64.high %v357_v36, %v356_v53, %v1353_v54  ;;  %v1356_v56 = vmul.u32.u64.low %v357_v36, %v352_v52  ;;  %v1357_v57 = vmul.u32.u64.high %v357_v36, %v352_v52, %v1356_v56 }
  0x77   : > { %v518_v54 = vld [vmem:[%s1326_s22 + $0x10] sm:$0xff] }
  0x78   : > { %vm366_vm5 = vc.u32 %v1354_v55, %v1356_v56  ;;  %v367_v59 = vadd.s32 1, %v1357_v57  ;;  %v365_v6 = vadd.s32 %v1356_v56, %v1354_v55  ;;  %v522_v55 = vld [vmem:[%s1332_s17 + $0x10] sm:$0xff] }
  0x7a   : > { %v368_v60 = vsel %vm366_vm5, %v367_v59, %v1357_v57 }
  0x7b   : > { %v369_v61 = vadd.s32 %v368_v60, %v364_v58 }
  0x7d   : > { %v370_v62 = vadd.s32 536870912, %v369_v61 }
  0x7f   : > { %v371_v63 = vshrl.u32 %v370_v62, 30 }
  0x81   : > { %v372_v0 = vshll.u32 %v371_v63, 30  ;;  %v395_v21 = vsub.s32 4, %v371_v63 }
  0x83   : > { %v373_v1 = vsub.s32 %v369_v61, %v372_v0  ;;  %v396_v24 = vsel %vm311_vm7, %v395_v21, %v371_v63 }
  0x84   : > { %v398_v26 = vsel %vm310_vm8, 0, %v396_v24 }
  0x85   : > { %v375_v2 = vsub.s32 0, %v373_v1  ;;  %v505_v27 = vadd.s32 3, %v398_v26  ;;  %v402_v28 = vand.u32 3, %v398_v26 }
  0x87   : > { %v870_v3 = vmin.u32 %v375_v2, %v373_v1  ;;  %v506_v29 = vand.u32 3, %v505_v27  ;;  %vm407_vm9 = vcmp.eq.s32.totalorder %v402_v28, 2  ;;  %vm404_vm11 = vcmp.eq.s32.totalorder %v402_v28, 0 }
  0x88   : > { %vm403_vm13 = vcmp.lt.s32.totalorder %v402_v28, 2 }
  0x89   : > { %v377_v4 = vclz %v870_v3  ;;  %vm511_vm10 = vcmp.eq.s32.totalorder %v506_v29, 2  ;;  %vm508_vm12 = vcmp.eq.s32.totalorder %v506_v29, 0  ;;  %vm507_vm14 = vcmp.lt.s32.totalorder %v506_v29, 2 }
  0x8b   : > { %v871_v5 = vadd.s32 4294967294, %v377_v4  ;;  %v548_v4 = vld [vmem:[%s1433_s3] sm:$0xff] }
  0x8d   : > { %vm872_vm6 = vcmp.lt.s32.totalorder %v871_v5, 0 }
  0x8e   : > { %v380_v8 = vsel %vm872_vm6, 0, %v871_v5 }
  0x8f   : > { %v381_v9 = vsub.s32 32, %v380_v8  ;;  %v382_v11 = vshll.u32 %v373_v1, %v380_v8  ;;  %v385_v12 = vsub.s32 4294967266, %v380_v8 }
  0x91   : > { %v383_v13 = vshrl.u32 %v365_v6, %v381_v9  ;;  %v386_v14 = vadd.s32 127, %v385_v12 }
  0x93   : > { %v384_v15 = vor.u32 %v383_v13, %v382_v11  ;;  %v387_v16 = vshll.u32 %v386_v14, 23 }
  0x95   : > { %v388_v17 = vor.u32 4788187, %v387_v16  ;;  %v391_v18 = vcvt.s32.f32 %v384_v15 }
  0x97   : > { %v389_v19 = vand.u32 2147483647, %v388_v17 }
  0x99   : > { %v392_v20 = vmul.f32 %v391_v18, %v389_v19 }
  0x9b   : > { %v393_v22 = vxor.u32 2147483648, %v392_v20 }
  0x9d   : > { %v394_v23 = vsel %vm311_vm7, %v393_v22, %v392_v20 }
  0x9e   : > { %v397_v25 = vsel %vm310_vm8, %v1347_v7, %v394_v23 }
  0x9f   : > { %981 = vcosq.f32 %v397_v25 }
  0xa0   : > { %983 = vsinq.f32 %v397_v25  ;;  %v717_v25 = vld [vmem:[#allocation2 + $0x10] sm:$0xff] }
  0xac   : > { %v982_v30 = vpop.eup %981 }
  0xad   : > { %v984_v31 = vpop.eup %983  ;;  %v408_v10 = vxor.u32 2147483648, %v982_v30 }
  0xae   : > { %v405_v32 = vxor.u32 2147483648, %v984_v31 }
  0xaf   : > { %v409_v33 = vsel %vm407_vm9, %v408_v10, %v984_v31  ;;  %v513_v34 = vsel %vm511_vm10, %v408_v10, %v984_v31  ;;  %v718_v31 = vld [vmem:[#allocation2] sm:$0xff] }
  0xb0   : > { %v406_v35 = vsel %vm404_vm11, %v982_v30, %v405_v32  ;;  %v510_v36 = vsel %vm508_vm12, %v982_v30, %v405_v32  ;;  %v719_v30 = vld [vmem:[#allocation2 + $0x18] sm:$0xff] }
  0xb1   : > { %v410_v39 = vsel %vm403_vm13, %v406_v35, %v409_v33  ;;  %v514_v40 = vsel %vm507_vm14, %v510_v36, %v513_v34  ;;  %v720_v35 = vld [vmem:[#allocation2 + $0x8] sm:$0xff] }
  0xb2   : > { %v411_v43 = vsel %vm401_vm15, nan, %v410_v39  ;;  %v515_v44 = vsel %vm401_vm15, nan, %v514_v40 }
  0xb3   : > { %v525_v47 = vmul.f32 %v517_v37, %v411_v43  ;;  %v529_v48 = vmul.f32 %v521_v38, %v515_v44  ;;  %v537_v7 = vmul.f32 %v521_v38, %v411_v43  ;;  %v541_v49 = vmul.f32 %v517_v37, %v515_v44 }
  0xb4   : > { %v527_v50 = vmul.f32 %v519_v41, %v411_v43  ;;  %v531_v51 = vmul.f32 %v523_v42, %v515_v44  ;;  %v539_v52 = vmul.f32 %v523_v42, %v411_v43  ;;  %v543_v53 = vmul.f32 %v519_v41, %v515_v44 }
  0xb5   : > { %v533_v56 = vadd.f32 %v529_v48, %v525_v47  ;;  %v545_v57 = vsub.f32 %v537_v7, %v541_v49  ;;  %v524_v58 = vmul.f32 %v516_v45, %v411_v43  ;;  %v528_v59 = vmul.f32 %v520_v46, %v515_v44 }
  0xb6   : > { %v535_v60 = vadd.f32 %v531_v51, %v527_v50  ;;  %v547_v61 = vsub.f32 %v539_v52, %v543_v53  ;;  %v536_v62 = vmul.f32 %v520_v46, %v411_v43  ;;  %v540_v63 = vmul.f32 %v516_v45, %v515_v44 }
  0xb7   : > { %589 = vmatprep.subr.mxu0 %v533_v56  ;;  %v532_v0 = vadd.f32 %v528_v59, %v524_v58  ;;  %v526_v1 = vmul.f32 %v518_v54, %v411_v43  ;;  %v530_v2 = vmul.f32 %v522_v55, %v515_v44  ;;  %v538_v3 = vmul.f32 %v522_v55, %v411_v43 }
  0xb8   : > { %660 = vmatprep.subr.mxu1 %v535_v60  ;;  %v542_v5 = vmul.f32 %v518_v54, %v515_v44  ;;  %v544_v6 = vsub.f32 %v536_v62, %v540_v63 }
  0xb9   : > { %590 = vmatpush1.msra.mxu0 %v532_v0  ;;  %v534_v8 = vadd.f32 %v530_v2, %v526_v1 }
  0xba   : > { %877 = vmatmul.mubr.msk.f32.vlgmr.msra.gmra.mxu0 %vm555_vm0, %v548_v4  ;;  %v546_v9 = vsub.f32 %v538_v3, %v542_v5 }
  0xbb   : > { %661 = vmatpush1.msra.mxu1 %v534_v8 }
  0xbc   : > { %878 = vmatmul.mubr.msk.f32.vlgmr.msra.gmra.mxu1 %vm555_vm0, %v548_v4 }
  0xd5   : > { %v553_v11 = vpop.permute.xlu0 %552 }
  0xdb   : > { %v707_v13 = vpop.permute.xlu0 %706 }
 0x17a   : > { %v625_v12 = vpop.f32.mrf.mxu0 }
 0x17b   : > { %v626_v14 = vadd.f32 %v625_v12, %v553_v11 }
 0x17c   : > { %v696_v15 = vpop.f32.mrf.mxu1  ;;  %v627_v16 = vpop.f32.mrf.mxu0 }
 0x17d   : > { %v709_v17 = vadd.f32 %v707_v13, %v626_v14  ;;  %v697_v18 = vadd.f32 %v696_v15, %v553_v11  ;;  %v628_v19 = vadd.f32 %v627_v16, %v553_v11 }
 0x17e   : > { %v698_v20 = vpop.f32.mrf.mxu1 }
 0x17f   : > { %v713_v21 = vsub.f32 %v709_v17, %v544_v6  ;;  %v711_v22 = vadd.f32 %v707_v13, %v697_v18  ;;  %v710_v23 = vadd.f32 %v707_v13, %v628_v19  ;;  %v699_v24 = vadd.f32 %v698_v20, %v553_v11 }
 0x181   : > { %v721_v26 = vmul.f32 %v713_v21, %v713_v21  ;;  %v715_v27 = vsub.f32 %v711_v22, %v546_v9  ;;  %v714_v28 = vsub.f32 %v710_v23, %v545_v57  ;;  %v712_v29 = vadd.f32 %v707_v13, %v699_v24 }
 0x183   : > { %v725_v10 = vadd.f32 %v721_v26, %v717_v25  ;;  %v723_v32 = vmul.f32 %v715_v27, %v715_v27  ;;  %v722_v33 = vmul.f32 %v714_v28, %v714_v28  ;;  %v716_v34 = vsub.f32 %v712_v29, %v547_v61 }
 0x185   : > { %729 = vst [vmem:[#allocation2 + $0x10] sm:$0xff] %v725_v10  ;;  %v727_v36 = vadd.f32 %v723_v32, %v719_v30  ;;  %v726_v37 = vadd.f32 %v722_v33, %v718_v31  ;;  %v724_v38 = vmul.f32 %v716_v34, %v716_v34  ;;  %738 = sbr.rel (%p1383_p11) target bundleno = 558 (0x22e), region = 56 }
 0x187   : > { %731 = vst [vmem:[#allocation2 + $0x18] sm:$0xff] %v727_v36  ;;  %730 = vst [vmem:[#allocation2] sm:$0xff] %v726_v37  ;;  %v728_v39 = vadd.f32 %v724_v38, %v720_v35 }
 0x189   : > { %732 = vst [vmem:[#allocation2 + $0x8] sm:$0xff] %v728_v39 }
 0x18a   : > { %vm755_vm1 = vcmask 0  }
 0x18c   : > { %v739_v40 = vld [vmem:[#allocation2 + $0x10] sm:$0xff] }
 0x18e   : > { %v740_v41 = vld [vmem:[#allocation2] sm:$0xff]  ;;  %v741_v42 = vld [vmem:[#allocation2 + $0x18] sm:$0xff] }
 0x18f   : > { %v743_v43 = vadd.f32 %v740_v41, %v739_v40 }
 0x190   : > { %v742_v44 = vld [vmem:[#allocation2 + $0x8] sm:$0xff] }
 0x191   : > { %v744_v45 = vadd.f32 %v743_v43, %v741_v42 }
 0x193   : > { %v745_v46 = vadd.f32 %v744_v45, %v742_v44 }
 0x195   : > { %746 = vadd.xlane.f32.xlu0 %v745_v46 }
 0x21e   : > { %v747_v47 = vpop.xlane.xlu0 %746 }
 0x21f   : > { %v748_v48 = vrot.slane %v747_v47, 4 }
 0x221   : > { %v749_v7 = vadd.f32 %v748_v48, %v747_v47 }
 0x223   : > { %v750_v49 = vrot.slane %v749_v7, 2 }
 0x225   : > { %v751_v50 = vadd.f32 %v750_v49, %v749_v7 }
 0x227   : > { %v752_v51 = vrot.slane %v751_v50, 1 }
 0x229   : > { %v753_v52 = vadd.f32 %v752_v51, %v751_v50 }
 0x22b   : > { %v754_v53 = vmul.f32 6.1035156e-05, %v753_v52 }
 0x22d   : > { %756 = vst.msk [vmem:[#allocation10] sm:$0x1] %vm755_vm1, %v754_v53 }
 0x22e PF: > { %s1445_s28 = sadd.s32 4294967295, %s1153_s8   ;;  %s1167_s12 = smov [#allocation10]  }
 0x22f   : > { %p1391_p13 = scmp.eq.s32.totalorder %s1445_s28, 3  ;;  %s764_s18 = sshll.u32 %s1167_s12, 4  ;;  %s765_s18 = int_to_ptr.vmem [resolvable:$true] %s764_s18 }
 0x230   : > { %s1053_s19 = scalar_lea.vmem %s765_s18, 16  ;;  %s1059_s26 = scalar_lea.vmem %s765_s18, 32 }
 0x231   : > { %p1054_p0 = scmp.ne.s32.totalorder %s765_s18, %s1053_s19  ;;  %p1060_p2 = scmp.lt.s32.totalorder %s765_s18, %s765_s18 }
 0x232   : > { %p1061_p3 = scmp.lt.s32.totalorder %s1059_s26, %s1053_s19 }
 0x233   : > { %p1055_p5 = pnand %p1054_p0, %p1391_p13 }
 0x234   : > { %p1062_p7 = por %p1061_p3, %p1060_p2 }
 0x235   : > { %p1056_p6 = pneg %p1055_p5 }
 0x237   : > { %p1063_p8 = pnand %p1062_p7, %p1056_p6 }
 0x239   : > { %1066 = shalt.err (!%p1063_p8)
}
 0x23a   : > { %892 = dma.vmem_to_hbm [thread:$0]  (%p1391_p13), %s765_s18, 16, %s1436_s6, [#allocation7]  }
 0x23b   : > { %1120 = dma.done.wait (%p1391_p13), [#allocation7], 16  }
 0x23c   : > { %1122 = vsyncadd (%p1391_p13), [#allocation7], 4294967280 }
 0x23d PF: > { %s29_s8 = sadd.s32 1, %s1153_s8   ;;  %s1447_s17 = sld [smem:[#allocation15_spill]] }
 0x23e   : > { %p26_p1 = scmp.ge.s32.totalorder %s29_s8, 6   ;;  %s1448_s26 = smov %s1129_s0 }
 0x23f   : > { %s1449_s0 = smov %s1133_s27  ;;  %s1450_s27 = smov %s1278_s21 }
 0x240   : > { %s1451_s28 = smov %s1145_s30  ;;  %s1452_s29 = smov %s1149_s7 }
 0x241   : > { %s1453_s30 = smov %s1456_s10  ;;  %28 = sbr.rel (!%p26_p1) target bundleno = 23 (0x17), region = 98 }
 0x243   : > { %s1454_s7 = smov %s1447_s17 }
 0x246   :  { %777 = vsyncpa [#allocation6], 1 }
 0x247   :  { %779 = vsyncpa [#allocation6 + $0x1], 1 }
 0x248   :  { %780 = vsyncpa [#allocation9], 1 }
 0x249   :  { %782 = vsyncpa [#allocation9 + $0x1], 1 }
 0x24a   :  { %783 = vsyncpa [#allocation7], 1 }
 0x24b   :  { %785 = vsyncpa [#allocation7 + $0x1], 1 }

</bundles_post_ra>
